<compile_context>
chip_gen: v7x
topology: tpu7x:2x2x1
jax: 0.10.0
libtpu: 0.0.40
codegen_flags: <defaults>
</compile_context>

<pallas_src>
import jax
import jax.numpy as jnp
from jax.experimental import pallas as pl
from jax.experimental.pallas import tpu as pltpu


def _round_up(x: int, m: int) -> int:
    return ((x + m - 1) // m) * m


def _self_attn_kernel(tw_ref, bias_ref, w1b_ref, w2b_ref, e_ref, r_ref, out_ref):
    tw = tw_ref[...]                                               # (Bt, L*D) bf16

    # linear1 for every (example, position) at once: lane-dense MXU matmul
    # against the block-diagonal weight; f32 accumulation, f32 tanh on EUP.
    h = jnp.tanh(jnp.dot(tw, w1b_ref[...],
                         preferred_element_type=jnp.float32))      # (Bt, L*O) f32

    # linear2 + scatter of each position's logit onto its own lane: second
    # block-diagonal matmul -> logits come out lane-dense, no relayout.
    logits = jnp.dot(h.astype(jnp.bfloat16), w2b_ref[...],
                     preferred_element_type=jnp.float32)           # (Bt, L) f32
    logits = logits + bias_ref[...]                                # 0 / -1e30 mask

    # Numerically-stable softmax over the position (lane) axis.
    mx = jnp.max(logits, axis=1, keepdims=True)                    # (Bt, 1)
    ex = jnp.exp(logits - mx)                                      # (Bt, L)
    denom = jnp.sum(ex, axis=1, keepdims=True)                     # (Bt, 1)
    attn = ex * pl.reciprocal(denom, approx=True)                  # (Bt, L)

    # Weighted average of tsr: broadcast attn across each position's D features
    # with a 0/1 selection matmul, multiply, then sum positions with a second
    # 0/1 selection matmul (f32 accumulation on the MXU).
    attn_w = jnp.dot(attn.astype(jnp.bfloat16), e_ref[...],
                     preferred_element_type=jnp.float32)           # (Bt, L*D) f32
    weighted = tw * attn_w.astype(jnp.bfloat16)                    # (Bt, L*D) bf16
    avg = jnp.dot(weighted, r_ref[...],
                  preferred_element_type=jnp.float32)              # (Bt, D) f32
    out_ref[...] = avg.astype(out_ref.dtype)


def self_attention_iclr2017(tsr, mask, w1, w2, *, batch_tile=512):
    """
    tsr  : (B, L, D) float32
    mask : (B, L)    0./1. (float or bool); positions where mask == 0 are masked
    w1   : (out_dim, inp_dim)  -- nn.Linear(inp_dim, out_dim, bias=False).weight
    w2   : (num_heads, out_dim), num_heads must be 1 (as the PyTorch forward implies)
    returns (B, D) float32
    """
    B, L, D = tsr.shape
    O, Din = w1.shape
    H, O2 = w2.shape
    assert Din == D and O2 == O
    assert H == 1, "SelfAttentionICLR2017 forward is only well-defined for num_heads == 1"

    L_pad = _round_up(L, 8)
    # Adaptive batch tile: as large as requested (default 512 rows), but keep
    # at least 2 grid steps when the batch allows it (megacore / v7x 2-TC).
    Bt = min(int(batch_tile), max(8, _round_up(pl.cdiv(B, 2), 8)))
    Bt = _round_up(Bt, 8)
    B_pad = _round_up(B, Bt)
    LD = L_pad * D
    LO = L_pad * O

    # tsr -> lane-dense (B_pad, L_pad*D) bf16 slab (one feature row per example).
    t_wide = jnp.pad(tsr.astype(jnp.float32),
                     ((0, B_pad - B), (0, L_pad - L), (0, 0)))
    t_wide = t_wide.reshape(B_pad, LD).astype(jnp.bfloat16)

    # Additive mask bias: 0 where mask != 0 (valid), -1e30 where mask == 0.
    # Padded positions / padded batch rows are masked too (padded rows end up
    # with a finite uniform softmax over zero inputs -> zero output, sliced away).
    neg = jnp.float32(-1e30)
    bias = jnp.where(mask == 0, neg, jnp.float32(0.0)).astype(jnp.float32)   # (B, L)
    bias = jnp.pad(bias, ((0, B_pad - B), (0, L_pad - L)), constant_values=neg)

    # Constant block-diagonal / selection weights (tiny; DMA'd once since their
    # block index never changes across the grid).
    eye_l = jnp.eye(L_pad, dtype=jnp.float32)
    w1_big = jnp.kron(eye_l, jnp.asarray(w1, jnp.float32).T).astype(jnp.bfloat16)   # (L*D, L*O)
    w2_big = jnp.kron(eye_l, jnp.asarray(w2, jnp.float32).T).astype(jnp.bfloat16)   # (L*O, L)
    e_mat = jnp.kron(eye_l, jnp.ones((1, D), jnp.float32)).astype(jnp.bfloat16)     # (L, L*D)
    r_mat = jnp.kron(jnp.ones((L_pad, 1), jnp.float32),
                     jnp.eye(D, dtype=jnp.float32)).astype(jnp.bfloat16)             # (L*D, D)

    grid = (B_pad // Bt,)
    out = pl.pallas_call(
        _self_attn_kernel,
        out_shape=jax.ShapeDtypeStruct((B_pad, D), jnp.float32),
        grid_spec=pltpu.PrefetchScalarGridSpec(
            num_scalar_prefetch=0,
            grid=grid,
            in_specs=[
                pl.BlockSpec((Bt, LD), lambda g: (g, 0)),        # tsr slab (bf16)
                pl.BlockSpec((Bt, L_pad), lambda g: (g, 0)),     # mask bias (lane-dense)
                pl.BlockSpec((LD, LO), lambda g: (0, 0)),        # blockdiag(W1^T)
                pl.BlockSpec((LO, L_pad), lambda g: (0, 0)),     # blockdiag(w2)
                pl.BlockSpec((L_pad, LD), lambda g: (0, 0)),     # attn expand (0/1)
                pl.BlockSpec((LD, D), lambda g: (0, 0)),         # position reduce (0/1)
            ],
            out_specs=pl.BlockSpec((Bt, D), lambda g: (g, 0)),
        ),
        compiler_params=pltpu.CompilerParams(
            dimension_semantics=("parallel",),
            vmem_limit_bytes=48 * 1024 * 1024),
    )(t_wide, bias, w1_big, w2_big, e_mat, r_mat)

    return out[:B]


def _reference(tsr, mask, w1, w2):
    # Pure-JAX mirror of the PyTorch forward (num_heads == 1).
    tmp = jnp.tanh(jnp.einsum("bld,od->blo", tsr, w1))
    logits = jnp.einsum("blo,ho->blh", tmp, w2)[..., 0]            # (B, L)
    logits = jnp.where(mask == 0, -jnp.inf, logits)
    attn = jax.nn.softmax(logits, axis=-1)                         # (B, L)
    return jnp.sum(tsr * attn[..., None], axis=1)                  # (B, D)


if __name__ == "__main__":
    inp_dim, out_dim, num_heads = 32, 32, 1

    key = jax.random.PRNGKey(0)
    k1, k2, k3, k4, k5, k6 = jax.random.split(key, 6)

    w1 = 0.1 * jax.random.normal(k3, (out_dim, inp_dim), dtype=jnp.float32)
    w2 = 0.1 * jax.random.normal(k4, (num_heads, out_dim), dtype=jnp.float32)

    # Case 1: two batch tiles (adaptive Bt=32), sequence length padded 12 -> 16.
    B, L = 64, 12
    tsr = jax.random.normal(k1, (B, L, inp_dim), dtype=jnp.float32)
    lengths = jax.random.randint(k2, (B,), minval=1, maxval=L + 1)
    mask = (jnp.arange(L)[None, :] < lengths[:, None]).astype(jnp.float32)

    out = jax.block_until_ready(self_attention_iclr2017(tsr, mask, w1, w2))
    ref = _reference(tsr, mask, w1, w2)
    assert out.shape == (B, inp_dim)
    assert jnp.allclose(out, ref, atol=2e-2, rtol=2e-2), \
        f"max abs err {float(jnp.max(jnp.abs(out - ref)))}"

    # Case 2: batch smaller than a tile (exercises batch padding, grid of 1).
    B2, L2 = 5, 8
    tsr2 = jax.random.normal(k5, (B2, L2, inp_dim), dtype=jnp.float32)
    lengths2 = jax.random.randint(k6, (B2,), minval=1, maxval=L2 + 1)
    mask2 = (jnp.arange(L2)[None, :] < lengths2[:, None]).astype(jnp.float32)

    out2 = jax.block_until_ready(self_attention_iclr2017(tsr2, mask2, w1, w2))
    ref2 = _reference(tsr2, mask2, w1, w2)
    assert out2.shape == (B2, inp_dim)
    assert jnp.allclose(out2, ref2, atol=2e-2, rtol=2e-2), \
        f"max abs err {float(jnp.max(jnp.abs(out2 - ref2)))}"

    print("KERNEL_OK")
</pallas_src>

<mosaic_0001>
module attributes {stable_mosaic.version = 11 : i64} {
  func.func @_self_attn_kernel(%arg0: i32, %arg1: memref<32x512xbf16, #tpu.memory_space<vmem>>, %arg2: memref<32x16xf32, #tpu.memory_space<vmem>>, %arg3: memref<512x512xbf16, #tpu.memory_space<vmem>>, %arg4: memref<512x16xbf16, #tpu.memory_space<vmem>>, %arg5: memref<16x512xbf16, #tpu.memory_space<vmem>>, %arg6: memref<512x32xbf16, #tpu.memory_space<vmem>>, %arg7: memref<32x32xf32, #tpu.memory_space<vmem>>) attributes {dimension_semantics = [#tpu.dimension_semantics<parallel>], iteration_bounds = array<i64: 2>, scalar_prefetch = 0 : i64, scratch_operands = 0 : i64, tpu.core_type = #tpu.core_type<tc>, window_params = [{transform_indices = @transform_0, window_bounds = array<i64: 32, 512>}, {transform_indices = @transform_1, window_bounds = array<i64: 32, 16>}, {pipeline_mode = #tpu.pipeline_mode<synchronous>, transform_indices = @transform_2, window_bounds = array<i64: 512, 512>}, {pipeline_mode = #tpu.pipeline_mode<synchronous>, transform_indices = @transform_3, window_bounds = array<i64: 512, 16>}, {pipeline_mode = #tpu.pipeline_mode<synchronous>, transform_indices = @transform_4, window_bounds = array<i64: 16, 512>}, {pipeline_mode = #tpu.pipeline_mode<synchronous>, transform_indices = @transform_5, window_bounds = array<i64: 512, 32>}, {transform_indices = @transform_6, window_bounds = array<i64: 32, 32>}]} {
    %c0 = arith.constant 0 : index
    %c0_0 = arith.constant 0 : index
    %0 = vector.load %arg1[%c0, %c0_0] : memref<32x512xbf16, #tpu.memory_space<vmem>>, vector<32x512xbf16>
    %c0_1 = arith.constant 0 : index
    %c0_2 = arith.constant 0 : index
    %1 = vector.load %arg3[%c0_1, %c0_2] : memref<512x512xbf16, #tpu.memory_space<vmem>>, vector<512x512xbf16>
    %cst = arith.constant dense<0.000000e+00> : vector<32x512xf32>
    %2 = tpu.matmul %0, %1, %cst {dimension_numbers = #tpu.dot_dimension_numbers<[1], [0], [0], [1], [0, 0, 1, 1], [], []>} : vector<32x512xbf16>, vector<512x512xbf16>, vector<32x512xf32> -> vector<32x512xf32>
    %3 = math.tanh %2 : vector<32x512xf32>
    %4 = arith.truncf %3 : vector<32x512xf32> to vector<32x512xbf16>
    %c0_3 = arith.constant 0 : index
    %c0_4 = arith.constant 0 : index
    %5 = vector.load %arg4[%c0_3, %c0_4] : memref<512x16xbf16, #tpu.memory_space<vmem>>, vector<512x16xbf16>
    %cst_5 = arith.constant dense<0.000000e+00> : vector<32x16xf32>
    %6 = tpu.matmul %4, %5, %cst_5 {dimension_numbers = #tpu.dot_dimension_numbers<[1], [0], [0], [1], [0, 0, 1, 1], [], []>} : vector<32x512xbf16>, vector<512x16xbf16>, vector<32x16xf32> -> vector<32x16xf32>
    %c0_6 = arith.constant 0 : index
    %c0_7 = arith.constant 0 : index
    %7 = vector.load %arg2[%c0_6, %c0_7] : memref<32x16xf32, #tpu.memory_space<vmem>>, vector<32x16xf32>
    %8 = arith.addf %6, %7 : vector<32x16xf32>
    %cst_8 = arith.constant dense<0xFF800000> : vector<32xf32>
    %9 = vector.multi_reduction <maximumf>, %8, %cst_8 [1] : vector<32x16xf32> to vector<32xf32>
    %10 = vector.shape_cast %9 : vector<32xf32> to vector<32x1xf32>
    %11 = vector.broadcast %10 : vector<32x1xf32> to vector<32x16xf32>
    %12 = arith.subf %8, %11 : vector<32x16xf32>
    %13 = math.exp %12 : vector<32x16xf32>
    %cst_9 = arith.constant dense<0.000000e+00> : vector<32xf32>
    %14 = vector.multi_reduction <add>, %13, %cst_9 [1] : vector<32x16xf32> to vector<32xf32>
    %15 = vector.shape_cast %14 : vector<32xf32> to vector<32x1xf32>
    %16 = tpu.reciprocal %15 {approx = true} : vector<32x1xf32> -> vector<32x1xf32>
    %17 = vector.broadcast %16 : vector<32x1xf32> to vector<32x16xf32>
    %18 = arith.mulf %13, %17 : vector<32x16xf32>
    %19 = arith.truncf %18 : vector<32x16xf32> to vector<32x16xbf16>
    %c0_10 = arith.constant 0 : index
    %c0_11 = arith.constant 0 : index
    %20 = vector.load %arg5[%c0_10, %c0_11] : memref<16x512xbf16, #tpu.memory_space<vmem>>, vector<16x512xbf16>
    %cst_12 = arith.constant dense<0.000000e+00> : vector<32x512xf32>
    %21 = tpu.matmul %19, %20, %cst_12 {dimension_numbers = #tpu.dot_dimension_numbers<[1], [0], [0], [1], [0, 0, 1, 1], [], []>} : vector<32x16xbf16>, vector<16x512xbf16>, vector<32x512xf32> -> vector<32x512xf32>
    %22 = arith.truncf %21 : vector<32x512xf32> to vector<32x512xbf16>
    %23 = arith.mulf %0, %22 : vector<32x512xbf16>
    %c0_13 = arith.constant 0 : index
    %c0_14 = arith.constant 0 : index
    %24 = vector.load %arg6[%c0_13, %c0_14] : memref<512x32xbf16, #tpu.memory_space<vmem>>, vector<512x32xbf16>
    %cst_15 = arith.constant dense<0.000000e+00> : vector<32x32xf32>
    %25 = tpu.matmul %23, %24, %cst_15 {dimension_numbers = #tpu.dot_dimension_numbers<[1], [0], [0], [1], [0, 0, 1, 1], [], []>} : vector<32x512xbf16>, vector<512x32xbf16>, vector<32x32xf32> -> vector<32x32xf32>
    %c0_16 = arith.constant 0 : index
    %c0_17 = arith.constant 0 : index
    %26 = vector.load %arg7[%c0_16, %c0_17] : memref<32x32xf32, #tpu.memory_space<vmem>>, vector<32x32xf32>
    tpu.vector_store %arg7[%c0_16, %c0_17], %25 {strides = array<i32>} : memref<32x32xf32, #tpu.memory_space<vmem>>, vector<32x32xf32>,
    return
  }
  func.func @transform_0(%arg0: i32) -> (i32, i32) {
    %c0_i32 = arith.constant 0 : i32
    %c0_i32_0 = arith.constant 0 : i32
    return %arg0, %c0_i32 : i32, i32
  }
  func.func @transform_1(%arg0: i32) -> (i32, i32) {
    %c0_i32 = arith.constant 0 : i32
    %c0_i32_0 = arith.constant 0 : i32
    return %arg0, %c0_i32 : i32, i32
  }
  func.func @transform_2(%arg0: i32) -> (i32, i32) {
    %c0_i32 = arith.constant 0 : i32
    %c0_i32_0 = arith.constant 0 : i32
    %c0_i32_1 = arith.constant 0 : i32
    return %c0_i32, %c0_i32_0 : i32, i32
  }
  func.func @transform_3(%arg0: i32) -> (i32, i32) {
    %c0_i32 = arith.constant 0 : i32
    %c0_i32_0 = arith.constant 0 : i32
    %c0_i32_1 = arith.constant 0 : i32
    return %c0_i32, %c0_i32_0 : i32, i32
  }
  func.func @transform_4(%arg0: i32) -> (i32, i32) {
    %c0_i32 = arith.constant 0 : i32
    %c0_i32_0 = arith.constant 0 : i32
    %c0_i32_1 = arith.constant 0 : i32
    return %c0_i32, %c0_i32_0 : i32, i32
  }
  func.func @transform_5(%arg0: i32) -> (i32, i32) {
    %c0_i32 = arith.constant 0 : i32
    %c0_i32_0 = arith.constant 0 : i32
    %c0_i32_1 = arith.constant 0 : i32
    return %c0_i32, %c0_i32_0 : i32, i32
  }
  func.func @transform_6(%arg0: i32) -> (i32, i32) {
    %c0_i32 = arith.constant 0 : i32
    %c0_i32_0 = arith.constant 0 : i32
    return %arg0, %c0_i32 : i32, i32
  }
}

</mosaic_0001>

<bundles_post_ra>
// kernel: tpu_custom_call.1
= control target key start
LH: loop header
LB: loop body
LE: loop exit
PB: predicated region body
PF: predicated region fallthrough
CT: control target
= control target key end

     0   :  { %11 = vsyncpa [#allocation3], 0  ;;  %s3226_s21 = smov 0   ;;  %s3556_s0 = inlined_call_operand.vmem [shape: bf16[64,512], index: 0, kind: input, shape index: {}]   ;;  %s3557_s1 = inlined_call_operand.vmem [shape: f32[64,16], index: 1, kind: input, shape index: {}]   ;;  %s3558_s2 = inlined_call_operand.hbm [shape: bf16[512,512], index: 2, kind: input, shape index: {}]   ;;  %s3559_s3 = inlined_call_operand.vmem [shape: bf16[512,16], index: 3, kind: input, shape index: {}]   ;;  %s3560_s4 = inlined_call_operand.vmem [shape: bf16[16,512], index: 4, kind: input, shape index: {}]   ;;  %s3561_s5 = inlined_call_operand.vmem [shape: bf16[512,32], index: 5, kind: input, shape index: {}]   ;;  %s3562_s6 = inlined_call_operand.vmem [shape: f32[64,32], index: 6, kind: output, shape index: {}]  }
   0x1 LB: > { %s2424_s22 = sadd.s32 4294967295, %s3185_s21   ;;  %p2426_p0 = scmp.ge.s32.totalorder %s3185_s21, 1  ;;  %s3185_s21 = sphi %s3226_s21, %s17_s21  }
   0x2   : > { %p184_p1 = scmp.lt.s32.totalorder %s3185_s21, 3  ;;  %s3187_s23 = smov [#allocation2]  }
   0x3   : > { %s196_s24 = sshll.u32 %s3187_s23, 4  ;;  %p3240_p3 = scmp.eq.s32.totalorder %s2424_s22, 0  ;;  %s197_s24 = int_to_ptr.vmem [resolvable:$true] %s196_s24 }
   0x4   : > { %p3234_p2 = pnand %p2426_p0, %p184_p1  ;;  %s3147_s30 = scalar_lea.hbm %s3558_s2, 16384 }
   0x5   : > { %s3567_s26 = scalar_select %p3240_p3, 1, 0 }
   0x6   : > { %s3566_s25 = scalar_select %p3234_p2, 1, 0 }
   0x7   : > { %p2805_p4 = pneg %p3234_p2  ;;  %p3148_p6 = scmp.ne.s32.totalorder %s3558_s2, %s3147_s30 }
   0x8   : > { %p3154_p10 = scmp.lt.u32.totalorder %s3147_s30, %s3558_s2 }
   0x9   : > { %p3248_p5 = pnand %p3240_p3, %p2805_p4 }
   0xb   : > { %p3149_p7 = pneg %p3248_p5 }
   0xd   : > { %p3150_p8 = pnand %p3149_p7, %p3148_p6 }
   0xf   : > { %p3151_p9 = pneg %p3150_p8 }
  0x11   : > { %p3156_p11 = pnand %p3154_p10, %p3151_p9 }
  0x13   : > { %3159 = shalt.err (!%p3156_p11)
}
  0x14   : > { %s3160_s11 = scalar_lea.vmem %s197_s24, 16384  ;;  %p3168_p1 = scmp.lt.s32.totalorder %s197_s24, %s197_s24 }
  0x15   : > { %p3161_p12 = scmp.ne.s32.totalorder %s197_s24, %s3160_s11  ;;  %p3169_p4 = scmp.lt.s32.totalorder %s3160_s11, %s3160_s11 }
  0x17   : > { %p3163_p13 = pnand %p3161_p12, %p3149_p7  ;;  %p3170_p3 = por %p3169_p4, %p3168_p1 }
  0x19   : > { %p3164_p0 = pneg %p3163_p13 }
  0x1b   : > { %p3171_p2 = pnand %p3170_p3, %p3164_p0 }
  0x1d   : > { %3174 = shalt.err (!%p3171_p2)
}
  0x1e   : > { %s3188_s12 = smov 256   ;;  %s3189_s13 = smov 16  }
  0x1f   : > { %2808 = dma.hbm_to_vmem [thread:$0]  (!%p3248_p5), %s3558_s2, 16384, %s197_s24, [#allocation3], %s3188_s12, %s3188_s12, %s3189_s13  }
  0x20   : > { %p3569_p6 = scmp.ne.s32.totalorder %s3566_s25, 0 }
  0x21   : > { %p3570_p8 = scmp.ne.s32.totalorder (!%p3569_p6), %s3567_s26, 0 }
  0x22   : > { %240 = sbr.rel (%p3569_p6) target bundleno = 1392 (0x570), region = 44 }
  0x29   : > { %3180 = dma.done.wait (%p3570_p8), [#allocation3], 16384  }
  0x2a   : > { %3182 = vsyncadd (%p3570_p8), [#allocation3], 4294950912  ;;  %v2823_v0 = vld [vmem:[#allocation2 + $0x4] ss:$16 sps:$4 sm:$0xff]   ;;  %v2825_v1 = vld [vmem:[#allocation2 + $0xc] ss:$16 sps:$4 sm:$0xff]  }
  0x2b   : > { %1112 = vmatprep.subr.bf16.mxu0 %v2823_v0  ;;  %v2827_v2 = vld [vmem:[#allocation2] ss:$16 sps:$4 sm:$0xff]   ;;  %v2828_v3 = vld [vmem:[#allocation2 + $0x8] ss:$16 sps:$4 sm:$0xff]   ;;  %1218 = vmatprep.subr.bf16.mxu1 %v2825_v1  ;;  %v2829_v4 = vld [vmem:[#allocation2 + $0x24] ss:$16 sps:$4 sm:$0xff]  }
  0x2c   : > { %1113 = vmatpush1.bf16.msra.mxu0 %v2827_v2  ;;  %1219 = vmatpush1.bf16.msra.mxu1 %v2828_v3  ;;  %v2831_v5 = vld [vmem:[#allocation2 + $0x2c] ss:$16 sps:$4 sm:$0xff]   ;;  %v2833_v6 = vld [vmem:[#allocation2 + $0x20] ss:$16 sps:$4 sm:$0xff]   ;;  %v2834_v7 = vld [vmem:[#allocation2 + $0x28] ss:$16 sps:$4 sm:$0xff]  }
  0x2d   : > { %1114 = vmatprep.subr.bf16.mxu0 %v2829_v4  ;;  %1220 = vmatprep.subr.bf16.mxu1 %v2831_v5  ;;  %v2835_v8 = vld [vmem:[#allocation2 + $0x44] ss:$16 sps:$4 sm:$0xff]   ;;  %v2837_v9 = vld [vmem:[#allocation2 + $0x4c] ss:$16 sps:$4 sm:$0xff]   ;;  %v2839_v10 = vld [vmem:[#allocation2 + $0x40] ss:$16 sps:$4 sm:$0xff]  }
  0x2e   : > { %v2840_v11 = vld [vmem:[#allocation2 + $0x48] ss:$16 sps:$4 sm:$0xff]   ;;  %v2841_v12 = vld [vmem:[#allocation2 + $0x64] ss:$16 sps:$4 sm:$0xff]   ;;  %v2843_v13 = vld [vmem:[#allocation2 + $0x6c] ss:$16 sps:$4 sm:$0xff]  }
  0x2f   : > { %v2845_v14 = vld [vmem:[#allocation2 + $0x60] ss:$16 sps:$4 sm:$0xff]   ;;  %v2846_v15 = vld [vmem:[#allocation2 + $0x68] ss:$16 sps:$4 sm:$0xff]   ;;  %v2847_v16 = vld [vmem:[#allocation2 + $0x84] ss:$16 sps:$4 sm:$0xff]  }
  0x30   : > { %1115 = vmatpush1.bf16.msra.mxu0 %v2833_v6  ;;  %1221 = vmatpush1.bf16.msra.mxu1 %v2834_v7  ;;  %v2849_v17 = vld [vmem:[#allocation2 + $0x8c] ss:$16 sps:$4 sm:$0xff]   ;;  %v2851_v18 = vld [vmem:[#allocation2 + $0x80] ss:$16 sps:$4 sm:$0xff]   ;;  %v2852_v19 = vld [vmem:[#allocation2 + $0x88] ss:$16 sps:$4 sm:$0xff]  }
  0x31   : > { %1116 = vmatprep.subr.bf16.mxu0 %v2835_v8  ;;  %1222 = vmatprep.subr.bf16.mxu1 %v2837_v9  ;;  %v2853_v20 = vld [vmem:[#allocation2 + $0xa4] ss:$16 sps:$4 sm:$0xff]   ;;  %v2855_v21 = vld [vmem:[#allocation2 + $0xac] ss:$16 sps:$4 sm:$0xff]   ;;  %v2857_v22 = vld [vmem:[#allocation2 + $0xa0] ss:$16 sps:$4 sm:$0xff]  }
  0x32   : > { %v2858_v23 = vld [vmem:[#allocation2 + $0xa8] ss:$16 sps:$4 sm:$0xff]   ;;  %v2859_v24 = vld [vmem:[#allocation2 + $0xc4] ss:$16 sps:$4 sm:$0xff]   ;;  %v2861_v25 = vld [vmem:[#allocation2 + $0xcc] ss:$16 sps:$4 sm:$0xff]  }
  0x33   : > { %v2863_v26 = vld [vmem:[#allocation2 + $0xc0] ss:$16 sps:$4 sm:$0xff]   ;;  %v2864_v27 = vld [vmem:[#allocation2 + $0xc8] ss:$16 sps:$4 sm:$0xff]   ;;  %v2865_v28 = vld [vmem:[#allocation2 + $0xe4] ss:$16 sps:$4 sm:$0xff]  }
  0x34   : > { %1117 = vmatpush1.bf16.msra.mxu0 %v2839_v10  ;;  %1223 = vmatpush1.bf16.msra.mxu1 %v2840_v11  ;;  %v2867_v29 = vld [vmem:[#allocation2 + $0xec] ss:$16 sps:$4 sm:$0xff]   ;;  %s2431_s16 = sshll.u32 %s2424_s22, 2  ;;  %v2869_v30 = vld [vmem:[#allocation2 + $0xe0] ss:$16 sps:$4 sm:$0xff]   ;;  %vm1706_vm0 = vcmask 130048  }
  0x35   : > { %1118 = vmatprep.subr.bf16.mxu0 %v2841_v12  ;;  %1224 = vmatprep.subr.bf16.mxu1 %v2843_v13  ;;  %v2870_v31 = vld [vmem:[#allocation2 + $0xe8] ss:$16 sps:$4 sm:$0xff]   ;;  %v2871_v32 = vld [vmem:[#allocation2 + $0x104] ss:$16 sps:$4 sm:$0xff]   ;;  %p277_p2 = scmp.lt.s32.totalorder %s2431_s16, 7  ;;  %vm2339_vm1 = vcmask 261120  }
  0x36   : > { %v2873_v33 = vld [vmem:[#allocation2 + $0x10c] ss:$16 sps:$4 sm:$0xff]   ;;  %v2875_v34 = vld [vmem:[#allocation2 + $0x100] ss:$16 sps:$4 sm:$0xff]   ;;  %v2876_v35 = vld [vmem:[#allocation2 + $0x108] ss:$16 sps:$4 sm:$0xff]  }
  0x37   : > { %v2877_v36 = vld [vmem:[#allocation2 + $0x124] ss:$16 sps:$4 sm:$0xff]   ;;  %s3572_s16 = smov (!%p277_p2, %s2431_s16), 7  ;;  %v2879_v37 = vld [vmem:[#allocation2 + $0x12c] ss:$16 sps:$4 sm:$0xff]  }
  0x38   : > { %1119 = vmatpush1.bf16.msra.mxu0 %v2845_v14  ;;  %1225 = vmatpush1.bf16.msra.mxu1 %v2846_v15  ;;  %v2881_v38 = vld [vmem:[#allocation2 + $0x120] ss:$16 sps:$4 sm:$0xff]   ;;  %v2882_v39 = vld [vmem:[#allocation2 + $0x128] ss:$16 sps:$4 sm:$0xff]   ;;  %v2883_v40 = vld [vmem:[#allocation2 + $0x144] ss:$16 sps:$4 sm:$0xff]  }
  0x39   : > { %1120 = vmatprep.subr.bf16.mxu0 %v2847_v16  ;;  %1226 = vmatprep.subr.bf16.mxu1 %v2849_v17  ;;  %s2664_s17 = sshll.u32 %s3572_s16, 4  ;;  %v2885_v41 = vld [vmem:[#allocation2 + $0x14c] ss:$16 sps:$4 sm:$0xff]   ;;  %v2887_v42 = vld [vmem:[#allocation2 + $0x140] ss:$16 sps:$4 sm:$0xff]   ;;  %s2435_s23 = sshll.u32 %s3572_s16, 3 }
  0x3a   : > { %v2888_v43 = vld [vmem:[#allocation2 + $0x148] ss:$16 sps:$4 sm:$0xff]   ;;  %s3282_s20 = scalar_lea.vmem %s3556_s0, %s2664_s17  ;;  %v2889_v44 = vld [vmem:[#allocation2 + $0x164] ss:$16 sps:$4 sm:$0xff]   ;;  %v2891_v45 = vld [vmem:[#allocation2 + $0x16c] ss:$16 sps:$4 sm:$0xff]   ;;  %s3410_s26 = scalar_lea.vmem %s3557_s1, %s2435_s23 }
  0x3b   : > { %v296_v46 = vld [vmem:[%s3282_s20] sm:$0xff]  ;;  %v298_v47 = vld [vmem:[%s3282_s20 + $0x10] sm:$0xff]  ;;  %v2894_v49 = vld [vmem:[#allocation2 + $0x168] ss:$16 sps:$4 sm:$0xff]   ;;  %s293_s17 = scalar_lea.vmem %s3562_s6, %s2435_s23 }
  0x3c   : > { %1121 = vmatpush1.bf16.msra.mxu0 %v2851_v18  ;;  %1227 = vmatpush1.bf16.msra.mxu1 %v2852_v19  ;;  %v2893_v48 = vld [vmem:[#allocation2 + $0x160] ss:$16 sps:$4 sm:$0xff]   ;;  %v2439_v50 = vcombine.high %v296_v46, %v298_v47  ;;  %v2895_v51 = vld [vmem:[#allocation2 + $0x184] ss:$16 sps:$4 sm:$0xff]   ;;  %v2897_v52 = vld [vmem:[#allocation2 + $0x18c] ss:$16 sps:$4 sm:$0xff]   ;;  %v2438_v5 = vcombine.low %v296_v46, %v298_v47 }
  0x3d   : > { %1122 = vmatprep.subr.bf16.mxu0 %v2853_v20  ;;  %1228 = vmatprep.subr.bf16.mxu1 %v2855_v21  ;;  %v2899_v53 = vld [vmem:[#allocation2 + $0x180] ss:$16 sps:$4 sm:$0xff]   ;;  %v2900_v54 = vld [vmem:[#allocation2 + $0x188] ss:$16 sps:$4 sm:$0xff]   ;;  %v2901_v55 = vld [vmem:[#allocation2 + $0x1a4] ss:$16 sps:$4 sm:$0xff]  }
  0x3e   : > { %1144 = vmatprep.mubr.bf16.mxu0 %v2439_v50  ;;  %1250 = vmatprep.mubr.bf16.mxu1 %v2439_v50  ;;  %v2903_v56 = vld [vmem:[#allocation2 + $0x1ac] ss:$16 sps:$4 sm:$0xff]   ;;  %v2905_v57 = vld [vmem:[#allocation2 + $0x1a0] ss:$16 sps:$4 sm:$0xff]   ;;  %v2906_v58 = vld [vmem:[#allocation2 + $0x1a8] ss:$16 sps:$4 sm:$0xff]  }
  0x3f   : > { %v2907_v59 = vld [vmem:[#allocation2 + $0x1c4] ss:$16 sps:$4 sm:$0xff]   ;;  %v2909_v60 = vld [vmem:[#allocation2 + $0x1cc] ss:$16 sps:$4 sm:$0xff]   ;;  %v2911_v61 = vld [vmem:[#allocation2 + $0x1c0] ss:$16 sps:$4 sm:$0xff]  }
  0x40   : > { %1123 = vmatpush1.bf16.msra.mxu0 %v2857_v22  ;;  %1229 = vmatpush1.bf16.msra.mxu1 %v2858_v23  ;;  %v2912_v62 = vld [vmem:[#allocation2 + $0x1c8] ss:$16 sps:$4 sm:$0xff]   ;;  %v2913_v63 = vld [vmem:[#allocation2 + $0x1e4] ss:$16 sps:$4 sm:$0xff]   ;;  %v2915_v0 = vld [vmem:[#allocation2 + $0x1ec] ss:$16 sps:$4 sm:$0xff]  }
  0x41   : > { %1124 = vmatprep.subr.bf16.mxu0 %v2859_v24  ;;  %1230 = vmatprep.subr.bf16.mxu1 %v2861_v25  ;;  %v2917_v1 = vld [vmem:[#allocation2 + $0x1e0] ss:$16 sps:$4 sm:$0xff]   ;;  %v2918_v2 = vld [vmem:[#allocation2 + $0x1e8] ss:$16 sps:$4 sm:$0xff]   ;;  %v2922_v3 = vld [vmem:[#allocation2 + $0x204] ss:$16 sps:$4 sm:$0xff]  }
  0x42   : > { %v2925_v4 = vld [vmem:[#allocation2 + $0x20c] ss:$16 sps:$4 sm:$0xff]   ;;  %v2920_v6 = vld [vmem:[#allocation2 + $0x200] ss:$16 sps:$4 sm:$0xff]   ;;  %v2923_v7 = vld [vmem:[#allocation2 + $0x208] ss:$16 sps:$4 sm:$0xff]  }
  0x43   : > { %v2929_v8 = vld [vmem:[#allocation2 + $0x224] ss:$16 sps:$4 sm:$0xff]   ;;  %v2932_v9 = vld [vmem:[#allocation2 + $0x22c] ss:$16 sps:$4 sm:$0xff]   ;;  %v2927_v10 = vld [vmem:[#allocation2 + $0x220] ss:$16 sps:$4 sm:$0xff]  }
  0x44   : > { %1125 = vmatpush1.bf16.msra.mxu0 %v2863_v26  ;;  %1231 = vmatpush1.bf16.msra.mxu1 %v2864_v27  ;;  %v2930_v11 = vld [vmem:[#allocation2 + $0x228] ss:$16 sps:$4 sm:$0xff]   ;;  %v2935_v12 = vld [vmem:[#allocation2 + $0x244] ss:$16 sps:$4 sm:$0xff]   ;;  %v2938_v13 = vld [vmem:[#allocation2 + $0x24c] ss:$16 sps:$4 sm:$0xff]  }
  0x45   : > { %1126 = vmatprep.subr.bf16.mxu0 %v2865_v28  ;;  %1232 = vmatprep.subr.bf16.mxu1 %v2867_v29  ;;  %v2933_v14 = vld [vmem:[#allocation2 + $0x240] ss:$16 sps:$4 sm:$0xff]   ;;  %v2936_v15 = vld [vmem:[#allocation2 + $0x248] ss:$16 sps:$4 sm:$0xff]   ;;  %v2941_v16 = vld [vmem:[#allocation2 + $0x264] ss:$16 sps:$4 sm:$0xff]  }
  0x46   : > { %v2944_v17 = vld [vmem:[#allocation2 + $0x26c] ss:$16 sps:$4 sm:$0xff]   ;;  %v2939_v18 = vld [vmem:[#allocation2 + $0x260] ss:$16 sps:$4 sm:$0xff]   ;;  %v2942_v19 = vld [vmem:[#allocation2 + $0x268] ss:$16 sps:$4 sm:$0xff]  }
  0x47   : > { %v2947_v20 = vld [vmem:[#allocation2 + $0x284] ss:$16 sps:$4 sm:$0xff]   ;;  %v2950_v21 = vld [vmem:[#allocation2 + $0x28c] ss:$16 sps:$4 sm:$0xff]   ;;  %v2945_v22 = vld [vmem:[#allocation2 + $0x280] ss:$16 sps:$4 sm:$0xff]  }
  0x48   : > { %1127 = vmatpush1.bf16.msra.mxu0 %v2869_v30  ;;  %1233 = vmatpush1.bf16.msra.mxu1 %v2870_v31  ;;  %v2948_v23 = vld [vmem:[#allocation2 + $0x288] ss:$16 sps:$4 sm:$0xff]   ;;  %v2953_v24 = vld [vmem:[#allocation2 + $0x2a4] ss:$16 sps:$4 sm:$0xff]   ;;  %v2956_v25 = vld [vmem:[#allocation2 + $0x2ac] ss:$16 sps:$4 sm:$0xff]  }
  0x49   : > { %1128 = vmatprep.subr.bf16.mxu0 %v2871_v32  ;;  %1234 = vmatprep.subr.bf16.mxu1 %v2873_v33  ;;  %v300_v26 = vld [vmem:[%s3282_s20 + $0x20] sm:$0xff]  ;;  %v302_v27 = vld [vmem:[%s3282_s20 + $0x30] sm:$0xff]  ;;  %v2954_v30 = vld [vmem:[#allocation2 + $0x2a8] ss:$16 sps:$4 sm:$0xff]  }
  0x4a   : > { %v2443_v28 = vcombine.high %v300_v26, %v302_v27  ;;  %v2951_v29 = vld [vmem:[#allocation2 + $0x2a0] ss:$16 sps:$4 sm:$0xff]   ;;  %v2442_v31 = vcombine.low %v300_v26, %v302_v27  ;;  %v2959_v32 = vld [vmem:[#allocation2 + $0x2c4] ss:$16 sps:$4 sm:$0xff]   ;;  %v2962_v33 = vld [vmem:[#allocation2 + $0x2cc] ss:$16 sps:$4 sm:$0xff]  }
  0x4b   : > { %v2972_v46 = vld [vmem:[#allocation2 + $0x308] ss:$16 sps:$4 sm:$0xff]   ;;  %v2977_v47 = vld [vmem:[#allocation2 + $0x324] ss:$16 sps:$4 sm:$0xff]  }
  0x4c   : > { %1129 = vmatpush1.bf16.msra.mxu0 %v2875_v34  ;;  %1235 = vmatpush1.bf16.msra.mxu1 %v2876_v35  ;;  %v3289_v34 = vld [vmem:[%s3282_s20 + $0x8] sm:$0xff]  ;;  %v2957_v35 = vld [vmem:[#allocation2 + $0x2c0] ss:$16 sps:$4 sm:$0xff]  }
  0x4d   : > { %1130 = vmatprep.subr.bf16.mxu0 %v2877_v36  ;;  %1236 = vmatprep.subr.bf16.mxu1 %v2879_v37  ;;  %v2960_v36 = vld [vmem:[#allocation2 + $0x2c8] ss:$16 sps:$4 sm:$0xff]   ;;  %v3033_v26 = vld [vmem:[%s3559_s3 + $0x10] sm:$0xff]  }
  0x4e   : > { %v3292_v37 = vld [vmem:[%s3282_s20 + $0x18] sm:$0xff]  ;;  %v3034_v27 = vld [vmem:[%s3559_s3 + $0x90] sm:$0xff]  }
  0x4f   : > { %v2978_v50 = vld [vmem:[#allocation2 + $0x328] ss:$16 sps:$4 sm:$0xff]  }
  0x50   : > { %1131 = vmatpush1.bf16.msra.mxu0 %v2881_v38  ;;  %1237 = vmatpush1.bf16.msra.mxu1 %v2882_v39  ;;  %v2965_v38 = vld [vmem:[#allocation2 + $0x2e4] ss:$16 sps:$4 sm:$0xff]   ;;  %v2441_v39 = vcombine.high %v3289_v34, %v3292_v37 }
  0x51   : > { %1132 = vmatprep.subr.bf16.mxu0 %v2883_v40  ;;  %1238 = vmatprep.subr.bf16.mxu1 %v2885_v41  ;;  %v2968_v40 = vld [vmem:[#allocation2 + $0x2ec] ss:$16 sps:$4 sm:$0xff]   ;;  %v2963_v41 = vld [vmem:[#allocation2 + $0x2e0] ss:$16 sps:$4 sm:$0xff]  }
  0x54   : > { %1133 = vmatpush1.bf16.msra.mxu0 %v2887_v42  ;;  %1239 = vmatpush1.bf16.msra.mxu1 %v2888_v43  ;;  %v2966_v42 = vld [vmem:[#allocation2 + $0x2e8] ss:$16 sps:$4 sm:$0xff]   ;;  %v2971_v43 = vld [vmem:[#allocation2 + $0x304] ss:$16 sps:$4 sm:$0xff]  }
  0x55   : > { %1134 = vmatprep.subr.bf16.mxu0 %v2889_v44  ;;  %1240 = vmatprep.subr.bf16.mxu1 %v2891_v45  ;;  %v2974_v44 = vld [vmem:[#allocation2 + $0x30c] ss:$16 sps:$4 sm:$0xff]   ;;  %v2969_v45 = vld [vmem:[#allocation2 + $0x300] ss:$16 sps:$4 sm:$0xff]  }
  0x58   : > { %1135 = vmatpush1.bf16.msra.mxu0 %v2893_v48  ;;  %1241 = vmatpush1.bf16.msra.mxu1 %v2894_v49  ;;  %v2980_v48 = vld [vmem:[#allocation2 + $0x32c] ss:$16 sps:$4 sm:$0xff]   ;;  %v2975_v49 = vld [vmem:[#allocation2 + $0x320] ss:$16 sps:$4 sm:$0xff]  }
  0x59   : > { %1136 = vmatprep.subr.bf16.mxu0 %v2895_v51  ;;  %1242 = vmatprep.subr.bf16.mxu1 %v2897_v52  ;;  %v2983_v51 = vld [vmem:[#allocation2 + $0x344] ss:$16 sps:$4 sm:$0xff]   ;;  %v2986_v52 = vld [vmem:[#allocation2 + $0x34c] ss:$16 sps:$4 sm:$0xff]  }
  0x5c   : > { %1137 = vmatpush1.bf16.msra.mxu0 %v2899_v53  ;;  %1243 = vmatpush1.bf16.msra.mxu1 %v2900_v54  ;;  %v2981_v53 = vld [vmem:[#allocation2 + $0x340] ss:$16 sps:$4 sm:$0xff]   ;;  %v2984_v54 = vld [vmem:[#allocation2 + $0x348] ss:$16 sps:$4 sm:$0xff]  }
  0x5d   : > { %1138 = vmatprep.subr.bf16.mxu0 %v2901_v55  ;;  %1244 = vmatprep.subr.bf16.mxu1 %v2903_v56  ;;  %v2989_v55 = vld [vmem:[#allocation2 + $0x364] ss:$16 sps:$4 sm:$0xff]   ;;  %v2992_v56 = vld [vmem:[#allocation2 + $0x36c] ss:$16 sps:$4 sm:$0xff]  }
  0x60   : > { %1139 = vmatpush1.bf16.msra.mxu0 %v2905_v57  ;;  %1245 = vmatpush1.bf16.msra.mxu1 %v2906_v58  ;;  %v2987_v57 = vld [vmem:[#allocation2 + $0x360] ss:$16 sps:$4 sm:$0xff]   ;;  %v2990_v58 = vld [vmem:[#allocation2 + $0x368] ss:$16 sps:$4 sm:$0xff]  }
  0x61   : > { %1140 = vmatprep.subr.bf16.mxu0 %v2907_v59  ;;  %1246 = vmatprep.subr.bf16.mxu1 %v2909_v60  ;;  %v2995_v59 = vld [vmem:[#allocation2 + $0x384] ss:$16 sps:$4 sm:$0xff]   ;;  %v2998_v60 = vld [vmem:[#allocation2 + $0x38c] ss:$16 sps:$4 sm:$0xff]  }
  0x64   : > { %1141 = vmatpush1.bf16.msra.mxu0 %v2911_v61  ;;  %1247 = vmatpush1.bf16.msra.mxu1 %v2912_v62  ;;  %v2993_v61 = vld [vmem:[#allocation2 + $0x380] ss:$16 sps:$4 sm:$0xff]   ;;  %v2996_v62 = vld [vmem:[#allocation2 + $0x388] ss:$16 sps:$4 sm:$0xff]  }
  0x65   : > { %1142 = vmatprep.subr.bf16.mxu0 %v2913_v63  ;;  %1248 = vmatprep.subr.bf16.mxu1 %v2915_v0  ;;  %v3001_v63 = vld [vmem:[#allocation2 + $0x3a4] ss:$16 sps:$4 sm:$0xff]   ;;  %v3004_v0 = vld [vmem:[#allocation2 + $0x3ac] ss:$16 sps:$4 sm:$0xff]  }
  0x68   : > { %1143 = vmatpush1.bf16.msra.mxu0 %v2917_v1  ;;  %1249 = vmatpush1.bf16.msra.mxu1 %v2918_v2  ;;  %v2999_v1 = vld [vmem:[#allocation2 + $0x3a0] ss:$16 sps:$4 sm:$0xff]   ;;  %v3002_v2 = vld [vmem:[#allocation2 + $0x3a8] ss:$16 sps:$4 sm:$0xff]  }
  0x69   : > { %1165 = vmatprep.subr.bf16.mxu0 %v2922_v3  ;;  %1271 = vmatprep.subr.bf16.mxu1 %v2925_v4  ;;  %v3009_v3 = vld [vmem:[#allocation2 + $0x3c4] ss:$16 sps:$4 sm:$0xff]   ;;  %v3012_v4 = vld [vmem:[#allocation2 + $0x3cc] ss:$16 sps:$4 sm:$0xff]  }
  0x6b   : > { %1145 = vmatmul.mubr.bf16.vlgmr.msra.gmra.mrb[0].mxu0 %v2438_v5  ;;  %1251 = vmatmul.mubr.bf16.vlgmr.msra.gmra.mrb[0].mxu1 %v2438_v5  ;;  %v3007_v5 = vld [vmem:[#allocation2 + $0x3c0] ss:$16 sps:$4 sm:$0xff]  }
  0x6c   : > { %1166 = vmatpush1.bf16.msra.mxu0 %v2920_v6  ;;  %1272 = vmatpush1.bf16.msra.mxu1 %v2923_v7  ;;  %v3010_v6 = vld [vmem:[#allocation2 + $0x3c8] ss:$16 sps:$4 sm:$0xff]   ;;  %v3015_v7 = vld [vmem:[#allocation2 + $0x3e4] ss:$16 sps:$4 sm:$0xff]  }
  0x6d   : > { %1167 = vmatprep.subr.bf16.mxu0 %v2929_v8  ;;  %1273 = vmatprep.subr.bf16.mxu1 %v2932_v9  ;;  %v3018_v8 = vld [vmem:[#allocation2 + $0x3ec] ss:$16 sps:$4 sm:$0xff]   ;;  %v3013_v9 = vld [vmem:[#allocation2 + $0x3e0] ss:$16 sps:$4 sm:$0xff]  }
  0x6e   : > { %1154 = vmatprep.mubr.bf16.mxu0 %v2443_v28  ;;  %1260 = vmatprep.mubr.bf16.mxu1 %v2443_v28  ;;  %v3035_v28 = vld [vmem:[%s3559_s3 + $0x58] sm:$0xff]  }
  0x70   : > { %1168 = vmatpush1.bf16.msra.mxu0 %v2927_v10  ;;  %1274 = vmatpush1.bf16.msra.mxu1 %v2930_v11  ;;  %v3016_v10 = vld [vmem:[#allocation2 + $0x3e8] ss:$16 sps:$4 sm:$0xff]  }
  0x71   : > { %1169 = vmatprep.subr.bf16.mxu0 %v2935_v12  ;;  %1275 = vmatprep.subr.bf16.mxu1 %v2938_v13  ;;  %v3297_v11 = vld [vmem:[%s3282_s20 + $0x28] sm:$0xff]  ;;  %v3300_v12 = vld [vmem:[%s3282_s20 + $0x38] sm:$0xff]  ;;  %v3023_v13 = vld [vmem:[%s3559_s3 + $0x40] sm:$0xff]  }
  0x73   : > { %1155 = vmatmul.mubr.bf16.gmra.mrb[4].mxu0 %v2442_v31  ;;  %1261 = vmatmul.mubr.bf16.gmra.mrb[4].mxu1 %v2442_v31  ;;  %v3038_v31 = vld [vmem:[%s3559_s3 + $0x98] sm:$0xff]  }
  0x74   : > { %1170 = vmatpush1.bf16.msra.mxu0 %v2933_v14  ;;  %1276 = vmatpush1.bf16.msra.mxu1 %v2936_v15  ;;  %v3024_v14 = vld [vmem:[%s3559_s3 + $0xc0] sm:$0xff]   ;;  %v2440_v15 = vcombine.low %v3289_v34, %v3292_v37  ;;  %v3044_v37 = vld [vmem:[%s3559_s3 + $0xe8] sm:$0xff]  }
  0x75   : > { %1171 = vmatprep.subr.bf16.mxu0 %v2941_v16  ;;  %1277 = vmatprep.subr.bf16.mxu1 %v2944_v17  ;;  %v3025_v16 = vld [vmem:[%s3559_s3] sm:$0xff]  }
  0x76   : > { %1197 = vmatprep.mubr.bf16.mxu0 %v2441_v39  ;;  %1303 = vmatprep.mubr.bf16.mxu1 %v2441_v39  ;;  %v3026_v17 = vld [vmem:[%s3559_s3 + $0x80] sm:$0xff]   ;;  %v3046_v39 = vld [vmem:[%s3559_s3 + $0xa8] sm:$0xff]  }
  0x77   : > { %v3041_v34 = vld [vmem:[%s3559_s3 + $0x20] sm:$0xff]  }
  0x78   : > { %1172 = vmatpush1.bf16.msra.mxu0 %v2939_v18  ;;  %1278 = vmatpush1.bf16.msra.mxu1 %v2942_v19  ;;  %v2445_v18 = vcombine.high %v3297_v11, %v3300_v12  ;;  %v3027_v19 = vld [vmem:[%s3559_s3 + $0x48] sm:$0xff]  }
  0x79   : > { %1173 = vmatprep.subr.bf16.mxu0 %v2947_v20  ;;  %1279 = vmatprep.subr.bf16.mxu1 %v2950_v21  ;;  %v3028_v20 = vld [vmem:[%s3559_s3 + $0xc8] sm:$0xff]  }
  0x7a   : > { %v3029_v21 = vld [vmem:[%s3559_s3 + $0x8] sm:$0xff]  }
  0x7c   : > { %1174 = vmatpush1.bf16.msra.mxu0 %v2945_v22  ;;  %1280 = vmatpush1.bf16.msra.mxu1 %v2948_v23  ;;  %v3030_v22 = vld [vmem:[%s3559_s3 + $0x88] sm:$0xff]   ;;  %v3031_v23 = vld [vmem:[%s3559_s3 + $0x50] sm:$0xff]  }
  0x7d   : > { %1175 = vmatprep.subr.bf16.mxu0 %v2953_v24  ;;  %1281 = vmatprep.subr.bf16.mxu1 %v2956_v25  ;;  %v3032_v24 = vld [vmem:[%s3559_s3 + $0xd0] sm:$0xff]   ;;  %v2444_v25 = vcombine.low %v3297_v11, %v3300_v12 }
  0x80   : > { %1176 = vmatpush1.bf16.msra.mxu0 %v2951_v29  ;;  %1282 = vmatpush1.bf16.msra.mxu1 %v2954_v30  ;;  %v3036_v29 = vld [vmem:[%s3559_s3 + $0xd8] sm:$0xff]  }
  0x81   : > { %1177 = vmatprep.subr.bf16.mxu0 %v2959_v32  ;;  %1283 = vmatprep.subr.bf16.mxu1 %v2962_v33  ;;  %v3037_v30 = vld [vmem:[%s3559_s3 + $0x18] sm:$0xff]   ;;  %v3039_v32 = vld [vmem:[%s3559_s3 + $0x60] sm:$0xff]  }
  0x82   : > { %v3040_v33 = vld [vmem:[%s3559_s3 + $0xe0] sm:$0xff]  }
  0x84   : > { %1178 = vmatpush1.bf16.msra.mxu0 %v2957_v35  ;;  %1284 = vmatpush1.bf16.msra.mxu1 %v2960_v36  ;;  %v3042_v35 = vld [vmem:[%s3559_s3 + $0xa0] sm:$0xff]   ;;  %v3043_v36 = vld [vmem:[%s3559_s3 + $0x68] sm:$0xff]  }
  0x85   : > { %1179 = vmatprep.subr.bf16.mxu0 %v2965_v38  ;;  %1285 = vmatprep.subr.bf16.mxu1 %v2968_v40  ;;  %v3045_v38 = vld [vmem:[%s3559_s3 + $0x28] sm:$0xff]   ;;  %v3047_v40 = vld [vmem:[%s3559_s3 + $0x70] sm:$0xff]  }
  0x88   : > { %1180 = vmatpush1.bf16.msra.mxu0 %v2963_v41  ;;  %1286 = vmatpush1.bf16.msra.mxu1 %v2966_v42  ;;  %v3048_v41 = vld [vmem:[%s3559_s3 + $0xf0] sm:$0xff]  }
  0x89   : > { %1181 = vmatprep.subr.bf16.mxu0 %v2971_v43  ;;  %1287 = vmatprep.subr.bf16.mxu1 %v2974_v44  ;;  %v3049_v42 = vld [vmem:[%s3559_s3 + $0x30] sm:$0xff]   ;;  %v3051_v44 = vld [vmem:[%s3559_s3 + $0x78] sm:$0xff]  }
  0x8a   : > { %v3050_v43 = vld [vmem:[%s3559_s3 + $0xb0] sm:$0xff]  }
  0x8c   : > { %1182 = vmatpush1.bf16.msra.mxu0 %v2969_v45  ;;  %1288 = vmatpush1.bf16.msra.mxu1 %v2972_v46  ;;  %v3052_v45 = vld [vmem:[%s3559_s3 + $0xf8] sm:$0xff]  }
  0x8d   : > { %1183 = vmatprep.subr.bf16.mxu0 %v2977_v47  ;;  %1289 = vmatprep.subr.bf16.mxu1 %v2980_v48  ;;  %v3053_v46 = vld [vmem:[%s3559_s3 + $0x38] sm:$0xff]  }
  0x8e   : > { %v3054_v47 = vld [vmem:[%s3559_s3 + $0xb8] sm:$0xff]  }
  0x90   : > { %1184 = vmatpush1.bf16.msra.mxu0 %v2975_v49  ;;  %1290 = vmatpush1.bf16.msra.mxu1 %v2978_v50 }
  0x91   : > { %1185 = vmatprep.subr.bf16.mxu0 %v2983_v51  ;;  %1291 = vmatprep.subr.bf16.mxu1 %v2986_v52 }
  0x94   : > { %1186 = vmatpush1.bf16.msra.mxu0 %v2981_v53  ;;  %1292 = vmatpush1.bf16.msra.mxu1 %v2984_v54 }
  0x95   : > { %1187 = vmatprep.subr.bf16.mxu0 %v2989_v55  ;;  %1293 = vmatprep.subr.bf16.mxu1 %v2992_v56 }
  0x98   : > { %1188 = vmatpush1.bf16.msra.mxu0 %v2987_v57  ;;  %1294 = vmatpush1.bf16.msra.mxu1 %v2990_v58 }
  0x99   : > { %1189 = vmatprep.subr.bf16.mxu0 %v2995_v59  ;;  %1295 = vmatprep.subr.bf16.mxu1 %v2998_v60 }
  0x9c   : > { %1190 = vmatpush1.bf16.msra.mxu0 %v2993_v61  ;;  %1296 = vmatpush1.bf16.msra.mxu1 %v2996_v62 }
  0x9d   : > { %1191 = vmatprep.subr.bf16.mxu0 %v3001_v63  ;;  %1297 = vmatprep.subr.bf16.mxu1 %v3004_v0 }
  0xa0   : > { %1192 = vmatpush1.bf16.msra.mxu0 %v2999_v1  ;;  %1298 = vmatpush1.bf16.msra.mxu1 %v3002_v2 }
  0xa1   : > { %1193 = vmatprep.subr.bf16.mxu0 %v3009_v3  ;;  %1299 = vmatprep.subr.bf16.mxu1 %v3012_v4 }
  0xa4   : > { %1194 = vmatpush1.bf16.msra.mxu0 %v3007_v5  ;;  %1300 = vmatpush1.bf16.msra.mxu1 %v3010_v6 }
  0xa5   : > { %1195 = vmatprep.subr.bf16.mxu0 %v3015_v7  ;;  %1301 = vmatprep.subr.bf16.mxu1 %v3018_v8 }
  0xa8   : > { %1196 = vmatpush1.bf16.msra.mxu0 %v3013_v9  ;;  %1302 = vmatpush1.bf16.msra.mxu1 %v3016_v10 }
  0xa9   : > { %2673 = vmatprep.subr.bf16.mxu0 %v3023_v13  ;;  %2701 = vmatprep.subr.bf16.mxu1 %v3024_v14 }
  0xab   : > { %1198 = vmatmul.mubr.bf16.vlgmr.msra.gmra.mrb[0].mxu0 %v2440_v15  ;;  %1304 = vmatmul.mubr.bf16.vlgmr.msra.gmra.mrb[0].mxu1 %v2440_v15 }
  0xac   : > { %1207 = vmatprep.mubr.bf16.mxu0 %v2445_v18  ;;  %1313 = vmatprep.mubr.bf16.mxu1 %v2445_v18 }
  0xad   : > { %2674 = vmatpush3.bf16.msra.mxu0 %v3025_v16  ;;  %2702 = vmatpush3.bf16.msra.mxu1 %v3026_v17 }
  0xae   : > { %2675 = vmatprep.subr.bf16.mxu0 %v3027_v19  ;;  %2703 = vmatprep.subr.bf16.mxu1 %v3028_v20 }
  0xb1   : > { %2676 = vmatpush3.bf16.msra.mxu0 %v3029_v21  ;;  %2704 = vmatpush3.bf16.msra.mxu1 %v3030_v22 }
  0xb2   : > { %2677 = vmatprep.subr.bf16.mxu0 %v3031_v23  ;;  %2705 = vmatprep.subr.bf16.mxu1 %v3032_v24 }
  0xb3   : > { %1208 = vmatmul.mubr.bf16.gmra.mrb[4].mxu0 %v2444_v25  ;;  %1314 = vmatmul.mubr.bf16.gmra.mrb[4].mxu1 %v2444_v25 }
  0xb5   : > { %2678 = vmatpush3.bf16.msra.mxu0 %v3033_v26  ;;  %2706 = vmatpush3.bf16.msra.mxu1 %v3034_v27 }
  0xb6   : > { %2679 = vmatprep.subr.bf16.mxu0 %v3035_v28  ;;  %2707 = vmatprep.subr.bf16.mxu1 %v3036_v29  ;;  %v1412_v28 = vld [vmem:[%s3410_s26] sm:$0xff] }
  0xb9   : > { %2680 = vmatpush3.bf16.msra.mxu0 %v3037_v30  ;;  %2708 = vmatpush3.bf16.msra.mxu1 %v3038_v31 }
  0xba   : > { %2681 = vmatprep.subr.bf16.mxu0 %v3039_v32  ;;  %2709 = vmatprep.subr.bf16.mxu1 %v3040_v33 }
  0xbd   : > { %2682 = vmatpush3.bf16.msra.mxu0 %v3041_v34  ;;  %2710 = vmatpush3.bf16.msra.mxu1 %v3042_v35  ;;  %v1413_v35 = vld [vmem:[%s3410_s26 + $0x8] sm:$0xff] }
  0xbe   : > { %2683 = vmatprep.subr.bf16.mxu0 %v3043_v36  ;;  %2711 = vmatprep.subr.bf16.mxu1 %v3044_v37 }
  0xc1   : > { %2684 = vmatpush3.bf16.msra.mxu0 %v3045_v38  ;;  %2712 = vmatpush3.bf16.msra.mxu1 %v3046_v39 }
  0xc2   : > { %2685 = vmatprep.subr.bf16.mxu0 %v3047_v40  ;;  %2713 = vmatprep.subr.bf16.mxu1 %v3048_v41 }
  0xc5   : > { %2686 = vmatpush3.bf16.msra.mxu0 %v3049_v42  ;;  %2714 = vmatpush3.bf16.msra.mxu1 %v3050_v43 }
  0xc6   : > { %2687 = vmatprep.subr.bf16.mxu0 %v3051_v44  ;;  %2715 = vmatprep.subr.bf16.mxu1 %v3052_v45 }
  0xc9   : > { %2688 = vmatpush3.bf16.msra.mxu0 %v3053_v46  ;;  %2716 = vmatpush3.bf16.msra.mxu1 %v3054_v47  ;;  %v1414_v47 = vld [vmem:[%s3410_s26 + $0x10] sm:$0xff] }
 0x17e   : > { %v1199_v48 = vpop.f32.mrb[0].mxu0  ;;  %v1305_v49 = vpop.f32.mrb[0].mxu1 }
 0x17f   : > { %3093 = vtanh.f32 %v1199_v48  ;;  %v1201_v50 = vpop.f32.mrb[1].mxu0  ;;  %v1307_v51 = vpop.f32.mrb[1].mxu1 }
 0x180   : > { %3095 = vtanh.f32 %v1305_v49  ;;  %v1203_v52 = vpop.f32.mrb[2].mxu0  ;;  %v1309_v53 = vpop.f32.mrb[2].mxu1 }
 0x181   : > { %3097 = vtanh.f32 %v1201_v50  ;;  %v1205_v54 = vpop.f32.mrb[3].mxu0  ;;  %v1311_v55 = vpop.f32.mrb[3].mxu1 }
 0x182   : > { %3099 = vtanh.f32 %v1307_v51 }
 0x183   : > { %3101 = vtanh.f32 %v1203_v52 }
 0x184   : > { %3103 = vtanh.f32 %v1309_v53 }
 0x185   : > { %3105 = vtanh.f32 %v1205_v54  ;;  %v1415_v54 = vld [vmem:[%s3410_s26 + $0x18] sm:$0xff] }
 0x186   : > { %3107 = vtanh.f32 %v1311_v55  ;;  %v1209_v56 = vpop.f32.mrb[4].mxu0  ;;  %v1315_v57 = vpop.f32.mrb[4].mxu1 }
 0x187   : > { %3109 = vtanh.f32 %v1209_v56  ;;  %v1211_v58 = vpop.f32.mrb[5].mxu0  ;;  %v1317_v59 = vpop.f32.mrb[5].mxu1 }
 0x188   : > { %3111 = vtanh.f32 %v1315_v57  ;;  %v1213_v60 = vpop.f32.mrb[6].mxu0  ;;  %v1319_v61 = vpop.f32.mrb[6].mxu1 }
 0x189   : > { %v3094_v62 = vpop.eup %3093  ;;  %3113 = vtanh.f32 %v1211_v58  ;;  %v1215_v63 = vpop.f32.mrb[7].mxu0 }
 0x18a   : > { %v1321_v0 = vpop.f32.mrb[7].mxu1  ;;  %v3096_v1 = vpop.eup %3095  ;;  %3115 = vtanh.f32 %v1317_v59 }
 0x18b   : > { %v3098_v2 = vpop.eup %3097  ;;  %3117 = vtanh.f32 %v1213_v60 }
 0x18c   : > { %v3100_v3 = vpop.eup %3099  ;;  %3119 = vtanh.f32 %v1319_v61 }
 0x18d   : > { %v3102_v4 = vpop.eup %3101  ;;  %3121 = vtanh.f32 %v1215_v63 }
 0x18e   : > { %v3104_v5 = vpop.eup %3103  ;;  %v1340_v6 = vpack.c.bf16 %v3102_v4, %v3094_v62  ;;  %3123 = vtanh.f32 %v1321_v0 }
 0x18f   : > { %v3106_v7 = vpop.eup %3105  ;;  %v1342_v8 = vpack.c.bf16 %v3104_v5, %v3096_v1 }
 0x190   : > { %v3108_v9 = vpop.eup %3107  ;;  %v1341_v10 = vpack.c.bf16 %v3106_v7, %v3098_v2 }
 0x191   : > { %v3110_v13 = vpop.eup %3109  ;;  %v1343_v14 = vpack.c.bf16 %v3108_v9, %v3100_v3 }
 0x192   : > { %v3112_v15 = vpop.eup %3111  ;;  %1640 = vmatprep.mubr.bf16.mxu0 %v1341_v10 }
 0x193   : > { %v3114_v16 = vpop.eup %3113  ;;  %1689 = vmatprep.mubr.bf16.mxu1 %v1343_v14  ;;  %1641 = vmatmul.mubr.bf16.vlgmr.msra.gmra.mrb[8].mxu0 %v1340_v6 }
 0x194   : > { %v3116_v17 = vpop.eup %3115  ;;  %1690 = vmatmul.mubr.bf16.vlgmr.msra.gmra.mrb[8].mxu1 %v1342_v8 }
 0x195   : > { %v3118_v18 = vpop.eup %3117 }
 0x196   : > { %v3120_v19 = vpop.eup %3119  ;;  %v1344_v20 = vpack.c.bf16 %v3118_v18, %v3110_v13 }
 0x197   : > { %v3122_v21 = vpop.eup %3121  ;;  %v1346_v22 = vpack.c.bf16 %v3120_v19, %v3112_v15 }
 0x198   : > { %v3124_v23 = vpop.eup %3123  ;;  %v1345_v24 = vpack.c.bf16 %v3122_v21, %v3114_v16 }
 0x199   : > { %v1347_v25 = vpack.c.bf16 %v3124_v23, %v3116_v17 }
 0x19a   : > { %1648 = vmatprep.mubr.bf16.mxu0 %v1345_v24  ;;  %v3055_v24 = vld [vmem:[%s3560_s4] ss:$16 sps:$4 sm:$0xff]  }
 0x19b   : > { %1697 = vmatprep.mubr.bf16.mxu1 %v1347_v25  ;;  %1649 = vmatmul.mubr.bf16.gmra.mrb[12].mxu0 %v1344_v20  ;;  %v3057_v25 = vld [vmem:[%s3560_s4 + $0x4] ss:$16 sps:$4 sm:$0xff]  }
 0x19c   : > { %1698 = vmatmul.mubr.bf16.gmra.mrb[12].mxu1 %v1346_v22  ;;  %1783 = vmatprep.subr.bf16.mxu0 %v3057_v25  ;;  %v3141_v25 = vld [vmem:[%s3282_s20] sm:$0xff] }
 0x19d   : > { %1784 = vmatpush1.bf16.msra.mxu0 %v3055_v24 }
 0x266   : > { %v2689_v26 = vpop.f32.mrb[8].mxu0 }
 0x267   : > { %v2717_v27 = vpop.f32.mrb[8].mxu1  ;;  %v2690_v29 = vpop.f32.mrb[9].mxu0 }
 0x268   : > { %v2691_v30 = vadd.f32 %v2690_v29, %v2689_v26  ;;  %v2718_v31 = vpop.f32.mrb[9].mxu1  ;;  %v2692_v32 = vpop.f32.mrb[10].mxu0  ;;  %v3058_v26 = vld [vmem:[%s3560_s4 + $0x8] ss:$16 sps:$4 sm:$0xff]   ;;  %v3061_v29 = vld [vmem:[%s3561_s5 + $0x40] sm:$0xff]  }
 0x269   : > { %v2719_v33 = vadd.f32 %v2718_v31, %v2717_v27  ;;  %v2720_v34 = vpop.f32.mrb[10].mxu1  ;;  %v2693_v36 = vpop.f32.mrb[11].mxu0  ;;  %v3060_v27 = vld [vmem:[%s3560_s4 + $0xc] ss:$16 sps:$4 sm:$0xff]   ;;  %2729 = vmatprep.subr.bf16.mxu0 %v3061_v29  ;;  %v3143_v29 = vld [vmem:[%s3282_s20 + $0x10] sm:$0xff] }
 0x26a   : > { %v1643_v37 = vadd.f32 %v2691_v30, %v1412_v28  ;;  %v2694_v38 = vadd.f32 %v2693_v36, %v2692_v32  ;;  %v2721_v39 = vpop.f32.mrb[11].mxu1  ;;  %1836 = vmatprep.subr.bf16.mxu1 %v3060_v27  ;;  %v3190_v28 = vmov 0   ;;  %v3062_v30 = vld [vmem:[%s3561_s5 + $0xc0] sm:$0xff]   ;;  %v3142_v27 = vld [vmem:[%s3282_s20 + $0x8] sm:$0xff] }
 0x26b   : > { %v2722_v40 = vadd.f32 %v2721_v39, %v2720_v34  ;;  %1837 = vmatpush1.bf16.msra.mxu1 %v3058_v26  ;;  %1815 = vmatprep.mubr.bf16.mxu0 %v3190_v28 }
 0x26c   : > { %v1646_v41 = vadd.f32 %v2694_v38, %v1413_v35  ;;  %v1692_v42 = vadd.f32 %v2719_v33, %v1643_v37  ;;  %1868 = vmatprep.mubr.bf16.mxu1 %v3190_v28  ;;  %2757 = vmatprep.subr.bf16.mxu1 %v3062_v30 }
 0x26e   : > { %v2695_v43 = vpop.f32.mrb[12].mxu0  ;;  %v1707_v44 = vsel %vm1706_vm0, %v1692_v42, -inf  ;;  %v1695_v45 = vadd.f32 %v2722_v40, %v1646_v41  ;;  %v3063_v40 = vld [vmem:[%s3561_s5] sm:$0xff]  }
 0x26f   : > { %v2723_v46 = vpop.f32.mrb[12].mxu1  ;;  %1708 = vmax.xlane.f32.xlu0 %v1707_v44  ;;  %v2696_v48 = vpop.f32.mrb[13].mxu0  ;;  %v3064_v41 = vld [vmem:[%s3561_s5 + $0x80] sm:$0xff]  }
 0x270   : > { %v2724_v49 = vpop.f32.mrb[13].mxu1  ;;  %v2697_v50 = vadd.f32 %v2696_v48, %v2695_v43  ;;  %v2698_v51 = vpop.f32.mrb[14].mxu0  ;;  %v1710_v59 = vsel %vm1706_vm0, %v1695_v45, -inf  ;;  %v3066_v43 = vld [vmem:[%s3561_s5 + $0xc8] sm:$0xff]   ;;  %v3069_v48 = vld [vmem:[%s3561_s5 + $0x50] sm:$0xff]  }
 0x271   : > { %v2725_v52 = vadd.f32 %v2724_v49, %v2723_v46  ;;  %v2726_v53 = vpop.f32.mrb[14].mxu1  ;;  %v2699_v55 = vpop.f32.mrb[15].mxu0  ;;  %v3068_v46 = vld [vmem:[%s3561_s5 + $0x88] sm:$0xff]   ;;  %v3070_v49 = vld [vmem:[%s3561_s5 + $0xd0] sm:$0xff]  }
 0x272   : > { %v1651_v56 = vadd.f32 %v2697_v50, %v1414_v47  ;;  %v2700_v57 = vadd.f32 %v2699_v55, %v2698_v51  ;;  %v2727_v58 = vpop.f32.mrb[15].mxu1  ;;  %v3073_v55 = vld [vmem:[%s3561_s5 + $0x58] sm:$0xff]  }
 0x273   : > { %v2728_v60 = vadd.f32 %v2727_v58, %v2726_v53  ;;  %1711 = vmax.xlane.f32.xlu0 %v1710_v59  ;;  %v3071_v53 = vld [vmem:[%s3561_s5 + $0x10] sm:$0xff]   ;;  %v3076_v58 = vld [vmem:[%s3561_s5 + $0x98] sm:$0xff]   ;;  %v3077_v59 = vld [vmem:[%s3561_s5 + $0x60] sm:$0xff]  }
 0x274   : > { %v1654_v61 = vadd.f32 %v2700_v57, %v1415_v54  ;;  %v1700_v62 = vadd.f32 %v2725_v52, %v1651_v56  ;;  %v3072_v54 = vld [vmem:[%s3561_s5 + $0x90] sm:$0xff]   ;;  %v3074_v56 = vld [vmem:[%s3561_s5 + $0xd8] sm:$0xff]  }
 0x275   : > { %v3075_v57 = vld [vmem:[%s3561_s5 + $0x18] sm:$0xff]  }
 0x276   : > { %v1713_v63 = vsel %vm1706_vm0, %v1700_v62, -inf  ;;  %v1703_v0 = vadd.f32 %v2728_v60, %v1654_v61  ;;  %v3078_v60 = vld [vmem:[%s3561_s5 + $0xe0] sm:$0xff]  }
 0x277   : > { %1714 = vmax.xlane.f32.xlu1 %v1713_v63  ;;  %v3079_v61 = vld [vmem:[%s3561_s5 + $0x20] sm:$0xff]   ;;  %v3081_v63 = vld [vmem:[%s3561_s5 + $0x68] sm:$0xff]  }
 0x278   : > { %v1716_v1 = vsel %vm1706_vm0, %v1703_v0, -inf }
 0x27b   : > { %1717 = vmax.xlane.f32.xlu1 %v1716_v1  ;;  %v3083_v1 = vld [vmem:[%s3561_s5 + $0x28] sm:$0xff]  }
 0x2fc   : > { %v1709_v2 = vpop.xlane.xlu0 %1708 }
 0x2fd   : > { %v1719_v3 = vsub.f32 %v1692_v42, %v1709_v2  ;;  %v3065_v42 = vld [vmem:[%s3561_s5 + $0x48] sm:$0xff]  }
 0x2fe   : > { %v3084_v2 = vld [vmem:[%s3561_s5 + $0xa8] sm:$0xff]  }
 0x2ff   : > { %v1723_v4 = vmul.f32 1.442695, %v1719_v3  ;;  %v3085_v3 = vld [vmem:[%s3561_s5 + $0x70] sm:$0xff]  }
 0x300   : > { %v1712_v5 = vpop.xlane.xlu0 %1711 }
 0x301   : > { %3125 = vpow2.f32 %v1723_v4  ;;  %v1720_v6 = vsub.f32 %v1695_v45, %v1712_v5  ;;  %v3067_v45 = vld [vmem:[%s3561_s5 + $0x8] sm:$0xff]   ;;  %v3086_v4 = vld [vmem:[%s3561_s5 + $0xf0] sm:$0xff]  }
 0x302   : > { %v3087_v5 = vld [vmem:[%s3561_s5 + $0x30] sm:$0xff]  }
 0x303   : > { %v1725_v7 = vmul.f32 1.442695, %v1720_v6  ;;  %v3088_v6 = vld [vmem:[%s3561_s5 + $0xb0] sm:$0xff]  }
 0x304   : > { %v1715_v8 = vpop.xlane.xlu1 %1714 }
 0x305   : > { %3127 = vpow2.f32 %v1725_v7  ;;  %v1721_v9 = vsub.f32 %v1700_v62, %v1715_v8  ;;  %v3080_v62 = vld [vmem:[%s3561_s5 + $0xa0] sm:$0xff]   ;;  %v3089_v7 = vld [vmem:[%s3561_s5 + $0x78] sm:$0xff]  }
 0x306   : > { %v3090_v8 = vld [vmem:[%s3561_s5 + $0xf8] sm:$0xff]  }
 0x307   : > { %v1727_v10 = vmul.f32 1.442695, %v1721_v9  ;;  %v3091_v9 = vld [vmem:[%s3561_s5 + $0x38] sm:$0xff]  }
 0x308   : > { %v1718_v13 = vpop.xlane.xlu1 %1717 }
 0x309   : > { %3129 = vpow2.f32 %v1727_v10  ;;  %v1722_v14 = vsub.f32 %v1703_v0, %v1718_v13  ;;  %v3082_v0 = vld [vmem:[%s3561_s5 + $0xe8] sm:$0xff]   ;;  %v3092_v10 = vld [vmem:[%s3561_s5 + $0xb8] sm:$0xff]  }
 0x30b   : > { %v3126_v15 = vpop.eup %3125  ;;  %v1729_v16 = vmul.f32 1.442695, %v1722_v14 }
 0x30c   : > { %v1731_v17 = vsel %vm1706_vm0, %v3126_v15, 0.0 }
 0x30d   : > { %3131 = vpow2.f32 %v1729_v16  ;;  %1732 = vadd.xlane.f32.xlu0 %v1731_v17 }
 0x30f   : > { %v3128_v18 = vpop.eup %3127 }
 0x310   : > { %v1734_v19 = vsel %vm1706_vm0, %v3128_v18, 0.0 }
 0x311   : > { %1735 = vadd.xlane.f32.xlu1 %v1734_v19 }
 0x313   : > { %v3130_v20 = vpop.eup %3129 }
 0x314   : > { %v1737_v21 = vsel %vm1706_vm0, %v3130_v20, 0.0 }
 0x315   : > { %1738 = vadd.xlane.f32.xlu0 %v1737_v21 }
 0x317   : > { %v3132_v22 = vpop.eup %3131 }
 0x318   : > { %v1740_v23 = vsel %vm1706_vm0, %v3132_v22, 0.0 }
 0x319   : > { %1741 = vadd.xlane.f32.xlu1 %v1740_v23 }
 0x39a   : > { %v1733_v31 = vpop.xlane.xlu0 %1732 }
 0x39b   : > { %3133 = vrcp.f32 %v1733_v31  ;;  %v3144_v31 = vld [vmem:[%s3282_s20 + $0x18] sm:$0xff] }
 0x39e   : > { %v1736_v32 = vpop.xlane.xlu1 %1735 }
 0x39f   : > { %3135 = vrcp.f32 %v1736_v32 }
 0x3a2   : > { %v1739_v33 = vpop.xlane.xlu0 %1738 }
 0x3a3   : > { %3137 = vrcp.f32 %v1739_v33 }
 0x3a5   : > { %v3134_v35 = vpop.eup %3133 }
 0x3a6   : > { %v1742_v34 = vpop.xlane.xlu1 %1741  ;;  %v1747_v37 = vmul.f32 %v3134_v35, %v3126_v15 }
 0x3a7   : > { %3139 = vrcp.f32 %v1742_v34 }
 0x3a9   : > { %v3136_v36 = vpop.eup %3135 }
 0x3aa   : > { %v1748_v38 = vmul.f32 %v3136_v36, %v3128_v18 }
 0x3ac   : > { %v1751_v39 = vpack.c.bf16 %v1748_v38, %v1747_v37 }
 0x3ad   : > { %v3138_v44 = vpop.eup %3137 }
 0x3ae   : > { %2610 = vmatmul.mubr.msk.bf16.vlgmr.msra.gmra.mrb[16].mxu0 %vm1706_vm0, %v1751_v39  ;;  %2612 = vmatmul.mubr.msk.bf16.vlgmr.msra.gmra.mrb[16].mxu1 %vm1706_vm0, %v1751_v39  ;;  %v1749_v50 = vmul.f32 %v3138_v44, %v3130_v20 }
 0x3af   : > { %1825 = vmatprep.mubr.bf16.mxu0 %v3190_v28  ;;  %1878 = vmatprep.mubr.bf16.mxu1 %v3190_v28 }
 0x3b0   : > { %2730 = vmatpush3.bf16.msra.mxu0 %v3063_v40  ;;  %2758 = vmatpush3.bf16.msra.mxu1 %v3064_v41 }
 0x3b1   : > { %v3140_v47 = vpop.eup %3139  ;;  %2731 = vmatprep.subr.bf16.mxu0 %v3065_v42  ;;  %2759 = vmatprep.subr.bf16.mxu1 %v3066_v43 }
 0x3b2   : > { %v1750_v51 = vmul.f32 %v3140_v47, %v3132_v22 }
 0x3b4   : > { %v1752_v52 = vpack.c.bf16 %v1750_v51, %v1749_v50  ;;  %2732 = vmatpush3.bf16.msra.mxu0 %v3067_v45  ;;  %2760 = vmatpush3.bf16.msra.mxu1 %v3068_v46 }
 0x3b5   : > { %2733 = vmatprep.subr.bf16.mxu0 %v3069_v48  ;;  %2761 = vmatprep.subr.bf16.mxu1 %v3070_v49  ;;  %v3145_v49 = vld [vmem:[%s3282_s20 + $0x20] sm:$0xff] }
 0x3b6   : > { %2611 = vmatmul.mubr.msk.bf16.gmra.mrb[20].mxu0 %vm1706_vm0, %v1752_v52  ;;  %2613 = vmatmul.mubr.msk.bf16.gmra.mrb[20].mxu1 %vm1706_vm0, %v1752_v52  ;;  %v3146_v52 = vld [vmem:[%s3282_s20 + $0x30] sm:$0xff] }
 0x3b8   : > { %2734 = vmatpush3.bf16.msra.mxu0 %v3071_v53  ;;  %2762 = vmatpush3.bf16.msra.mxu1 %v3072_v54 }
 0x3b9   : > { %2735 = vmatprep.subr.bf16.mxu0 %v3073_v55  ;;  %2763 = vmatprep.subr.bf16.mxu1 %v3074_v56 }
 0x3bc   : > { %2736 = vmatpush3.bf16.msra.mxu0 %v3075_v57  ;;  %2764 = vmatpush3.bf16.msra.mxu1 %v3076_v58 }
 0x3bd   : > { %2737 = vmatprep.subr.bf16.mxu0 %v3077_v59  ;;  %2765 = vmatprep.subr.bf16.mxu1 %v3078_v60 }
 0x3c0   : > { %2738 = vmatpush3.bf16.msra.mxu0 %v3079_v61  ;;  %2766 = vmatpush3.bf16.msra.mxu1 %v3080_v62 }
 0x3c1   : > { %2739 = vmatprep.subr.bf16.mxu0 %v3081_v63  ;;  %2767 = vmatprep.subr.bf16.mxu1 %v3082_v0 }
 0x3c4   : > { %2740 = vmatpush3.bf16.msra.mxu0 %v3083_v1  ;;  %2768 = vmatpush3.bf16.msra.mxu1 %v3084_v2 }
 0x3c5   : > { %2741 = vmatprep.subr.bf16.mxu0 %v3085_v3  ;;  %2769 = vmatprep.subr.bf16.mxu1 %v3086_v4 }
 0x3c8   : > { %2742 = vmatpush3.bf16.msra.mxu0 %v3087_v5  ;;  %2770 = vmatpush3.bf16.msra.mxu1 %v3088_v6 }
 0x3c9   : > { %2743 = vmatprep.subr.bf16.mxu0 %v3089_v7  ;;  %2771 = vmatprep.subr.bf16.mxu1 %v3090_v8 }
 0x3cc   : > { %2744 = vmatpush3.bf16.msra.mxu0 %v3091_v9  ;;  %2772 = vmatpush3.bf16.msra.mxu1 %v3092_v10 }
 0x481   : > { %v1817_v13 = vpop.f32.mrb[16].mxu0  ;;  %v1870_v14 = vpop.f32.mrb[16].mxu1 }
 0x482   : > { %v1819_v15 = vpop.f32.mrb[17].mxu0  ;;  %v1872_v16 = vpop.f32.mrb[17].mxu1 }
 0x483   : > { %v2665_v17 = vpack.c.bf16 %v1819_v15, %v1817_v13  ;;  %v2666_v18 = vpack.c.bf16 %v1872_v16, %v1870_v14  ;;  %v1821_v19 = vpop.f32.mrb[18].mxu0  ;;  %v1874_v20 = vpop.f32.mrb[18].mxu1 }
 0x484   : > { %v1823_v21 = vpop.f32.mrb[19].mxu0  ;;  %v1876_v22 = vpop.f32.mrb[19].mxu1 }
 0x485   : > { %v2667_v23 = vpack.c.bf16 %v1823_v21, %v1821_v19  ;;  %v2668_v24 = vpack.c.bf16 %v1876_v22, %v1874_v20  ;;  %v1937_v26 = vmul.bf16 %v3141_v25, %v2665_v17  ;;  %v1938_v28 = vmul.bf16 %v3142_v27, %v2666_v18 }
 0x487   : > { %v1939_v30 = vmul.bf16 %v3143_v29, %v2667_v23  ;;  %v1940_v32 = vmul.bf16 %v3144_v31, %v2668_v24 }
 0x489   : > { %v2622_v33 = vcombine.low %v1937_v26, %v1939_v30  ;;  %v2624_v34 = vcombine.low %v1938_v28, %v1940_v32  ;;  %v1827_v35 = vpop.f32.mrb[20].mxu0  ;;  %v1880_v36 = vpop.f32.mrb[20].mxu1  ;;  %v2623_v37 = vcombine.high %v1937_v26, %v1939_v30  ;;  %v2625_v38 = vcombine.high %v1938_v28, %v1940_v32 }
 0x48a   : > { %v1829_v39 = vpop.f32.mrb[21].mxu0  ;;  %v1882_v40 = vpop.f32.mrb[21].mxu1 }
 0x48b   : > { %v2669_v41 = vpack.c.bf16 %v1829_v39, %v1827_v35  ;;  %v2670_v42 = vpack.c.bf16 %v1882_v40, %v1880_v36  ;;  %v1831_v43 = vpop.f32.mrb[22].mxu0  ;;  %v1884_v44 = vpop.f32.mrb[22].mxu1  ;;  %2273 = vmatprep.mubr.bf16.mxu0 %v2623_v37  ;;  %2322 = vmatprep.mubr.bf16.mxu1 %v2625_v38 }
 0x48c   : > { %v1833_v45 = vpop.f32.mrb[23].mxu0  ;;  %v1886_v46 = vpop.f32.mrb[23].mxu1  ;;  %2274 = vmatmul.mubr.bf16.vlgmr.msra.gmra.mrb[24].mxu0 %v2622_v33  ;;  %2323 = vmatmul.mubr.bf16.vlgmr.msra.gmra.mrb[24].mxu1 %v2624_v34 }
 0x48d   : > { %v2671_v47 = vpack.c.bf16 %v1833_v45, %v1831_v43  ;;  %v2672_v48 = vpack.c.bf16 %v1886_v46, %v1884_v44  ;;  %v1941_v50 = vmul.bf16 %v3145_v49, %v2669_v41  ;;  %v1942_v51 = vmul.bf16 %v2670_v42, %v3297_v11 }
 0x48f   : > { %v1943_v53 = vmul.bf16 %v3146_v52, %v2671_v47  ;;  %v1944_v54 = vmul.bf16 %v2672_v48, %v3300_v12 }
 0x491   : > { %v2627_v55 = vcombine.high %v1941_v50, %v1943_v53  ;;  %v2629_v56 = vcombine.high %v1942_v51, %v1944_v54  ;;  %v2626_v57 = vcombine.low %v1941_v50, %v1943_v53  ;;  %v2628_v58 = vcombine.low %v1942_v51, %v1944_v54 }
 0x493   : > { %2281 = vmatprep.mubr.bf16.mxu0 %v2627_v55  ;;  %2330 = vmatprep.mubr.bf16.mxu1 %v2629_v56 }
 0x494   : > { %2282 = vmatmul.mubr.bf16.gmra.mrb[28].mxu0 %v2626_v57  ;;  %2331 = vmatmul.mubr.bf16.gmra.mrb[28].mxu1 %v2628_v58 }
 0x55f   : > { %v2745_v59 = vpop.f32.mrb[24].mxu0  ;;  %v2773_v60 = vpop.f32.mrb[24].mxu1 }
 0x560   : > { %v2746_v61 = vpop.f32.mrb[25].mxu0  ;;  %v2774_v62 = vpop.f32.mrb[25].mxu1 }
 0x561   : > { %v2747_v63 = vadd.f32 %v2746_v61, %v2745_v59  ;;  %v2775_v0 = vadd.f32 %v2774_v62, %v2773_v60  ;;  %v2748_v11 = vpop.f32.mrb[26].mxu0  ;;  %v2776_v1 = vpop.f32.mrb[26].mxu1 }
 0x562   : > { %v2749_v12 = vpop.f32.mrb[27].mxu0  ;;  %v2777_v2 = vpop.f32.mrb[27].mxu1 }
 0x563   : > { %v2325_v3 = vadd.f32 %v2775_v0, %v2747_v63  ;;  %v2750_v4 = vadd.f32 %v2749_v12, %v2748_v11  ;;  %v2778_v5 = vadd.f32 %v2777_v2, %v2776_v1 }
 0x565   : > { %2340 = vst.msk [vmem:[%s293_s17] sm:$0xff] %vm2339_vm1, %v2325_v3  ;;  %v2328_v6 = vadd.f32 %v2778_v5, %v2750_v4 }
 0x567   : > { %2341 = vst.msk [vmem:[%s293_s17 + $0x8] sm:$0xff] %vm2339_vm1, %v2328_v6  ;;  %v2751_v7 = vpop.f32.mrb[28].mxu0  ;;  %v2779_v8 = vpop.f32.mrb[28].mxu1 }
 0x568   : > { %v2752_v9 = vpop.f32.mrb[29].mxu0  ;;  %v2780_v10 = vpop.f32.mrb[29].mxu1 }
 0x569   : > { %v2753_v13 = vadd.f32 %v2752_v9, %v2751_v7  ;;  %v2781_v14 = vadd.f32 %v2780_v10, %v2779_v8  ;;  %v2754_v15 = vpop.f32.mrb[30].mxu0  ;;  %v2782_v16 = vpop.f32.mrb[30].mxu1 }
 0x56a   : > { %v2755_v17 = vpop.f32.mrb[31].mxu0  ;;  %v2783_v18 = vpop.f32.mrb[31].mxu1 }
 0x56b   : > { %v2333_v19 = vadd.f32 %v2781_v14, %v2753_v13  ;;  %v2756_v20 = vadd.f32 %v2755_v17, %v2754_v15  ;;  %v2784_v21 = vadd.f32 %v2783_v18, %v2782_v16 }
 0x56d   : > { %2342 = vst.msk [vmem:[%s293_s17 + $0x10] sm:$0xff] %vm2339_vm1, %v2333_v19  ;;  %v2336_v22 = vadd.f32 %v2784_v21, %v2756_v20 }
 0x56f   : > { %2343 = vst.msk [vmem:[%s293_s17 + $0x18] sm:$0xff] %vm2339_vm1, %v2336_v22 }
 0x570 PF: > { %s17_s21 = sadd.s32 1, %s3185_s21  }
 0x571   : > { %p14_p3 = scmp.ge.s32.totalorder %s17_s21, 4  }
 0x573   :  { %16 = sbr.rel (!%p14_p3) target bundleno = 1 (0x1), region = 82 }
 0x57a   :  { %2366 = vsyncpa [#allocation3], 1 }
 0x57b   :  { %2368 = vsyncpa [#allocation3 + $0x1], 1 }

</bundles_post_ra>
